<compile_context>
chip_gen: v7x
topology: tpu7x:2x2x1
jax: 0.10.0
libtpu: 0.0.40
codegen_flags: <defaults>
</compile_context>

<pallas_src>
import jax
import jax.numpy as jnp
from jax.experimental import pallas as pl
from jax.experimental.pallas import tpu as pltpu

# ImageNet normalization constants (same as the PyTorch module).
_MEAN = (0.485, 0.456, 0.406)
_STD = (0.229, 0.224, 0.225)

# Shapes used by the original module (small synthetic versions picked in main).
S_RESNET_SHAPE = (16, 16)   # stand-in for (224, 224)
S_VGGISH_SHAPE = (16, 8)    # stand-in for (96, 64)


def _make_input_kernel(conf: str, hw: int):
    """conf: 'repeat' -> all 3 channels are x; 'single' -> channels 1,2 are zeros."""
    inv_std = tuple(1.0 / s for s in _STD)
    # Value of a zero pixel after normalization: (0 - mean_c) / std_c.
    zero_fill = tuple((0.0 - m) * inv for m, inv in zip(_MEAN, inv_std))

    def kernel(x_ref, o_ref):
        # x_ref: (bm, H*W) block of single-channel images (lane-dense).
        # o_ref: (bm, 3*H*W) block: [ch0 | ch1 | ch2] per image, lane-dense.
        # The three VPU passes are free filler under the HBM writeback bound.
        x = x_ref[...].astype(jnp.float32)
        if conf == "repeat":
            for c in range(3):
                o_ref[:, c * hw:(c + 1) * hw] = (
                    (x - _MEAN[c]) * inv_std[c]).astype(o_ref.dtype)
        else:  # "single"
            o_ref[:, 0:hw] = ((x - _MEAN[0]) * inv_std[0]).astype(o_ref.dtype)
            for c in (1, 2):
                o_ref[:, c * hw:(c + 1) * hw] = jnp.full(
                    (x.shape[0], hw), zero_fill[c], dtype=o_ref.dtype)

    return kernel


def _vmem_capacity_bytes() -> int:
    """Physical VMEM per TensorCore; conservative fallback if query fails."""
    try:
        return int(pltpu.get_tpu_info().vmem_capacity_bytes)
    except Exception:
        return 64 << 20  # v7x per-TC value (the smallest of the 3 generations)


def _round_down_8(v: int) -> int:
    return (v // 8) * 8


def _pick_block_m(M: int, HW: int, in_isize: int, out_isize: int,
                  vmem_bytes: int) -> int:
    """Images per grid step, respecting (8,128) layout and VMEM budget."""
    if M <= 8:
        # block second-to-last dim must be a multiple of 8 or the full extent.
        return M
    # Double-buffered bytes per image: 2x input block + 2x (3-channel) output.
    per_row = HW * (2 * in_isize + 6 * out_isize)
    budget = int(0.45 * vmem_bytes)          # leave headroom for Mosaic scratch
    cap = max(8, min(32, _round_down_8(budget // max(per_row, 1))))
    # Guarantee >= 2 grid steps so v7x's 2 TCs shard the parallel axis and the
    # DMA pipeline (prefetch i+1 / writeback i-1) actually overlaps.
    two_step = _round_down_8(M // 2)
    if two_step >= 8:
        cap = min(cap, two_step)
    bm = cap
    # Prefer a bm that divides M (no masked partial last block).
    for cand in range(bm, 7, -8):
        if M % cand == 0:
            return cand
    return bm


def input_forward(x, cnn_type: str = "resnet", conf: str = "repeat",
                  block_m: int | None = None, out_dtype=None):
    """Equivalent of Input.forward.

    resnet: x (B, N, 1, H, W) -> (B*N, 3, H, W), per-channel ImageNet normalize.
    vggish: pure reshape to (-1, 1, S_VGGISH_SHAPE[0], S_VGGISH_SHAPE[1]).
    """
    if cnn_type == "vggish":
        # TODO(synk): no compute here — plain reshape, no kernel needed.
        return x.reshape((-1, 1, S_VGGISH_SHAPE[0], S_VGGISH_SHAPE[1]))
    if cnn_type != "resnet":
        raise Exception("CNN type is not valid.")
    if conf not in ("repeat", "single"):
        raise Exception("Invalid input type")

    B, N, C1, H, W = x.shape
    assert C1 == 1, "resnet path expects a single input channel before replication"
    M = B * N
    HW = H * W
    out_dtype = x.dtype if out_dtype is None else jnp.dtype(out_dtype)

    # Lane-dense 2D slabs: (M, H*W) in, (M, 3*H*W) out (row-major identical to
    # (M, 3, H, W)).
    x2 = x.reshape(M, HW)

    vmem_bytes = _vmem_capacity_bytes()
    in_isize = jnp.dtype(x.dtype).itemsize
    out_isize = jnp.dtype(out_dtype).itemsize

    bm = _pick_block_m(M, HW, in_isize, out_isize, vmem_bytes)
    if block_m is not None:
        # User-provided upper cap; keep the (8,128) layout constraint.
        bm = min(bm, max(1, block_m))
        if bm < M and bm % 8 != 0:
            bm = max(8, _round_down_8(bm))
        bm = min(bm, M)

    grid = (pl.cdiv(M, bm),)

    # Explicit VMEM limit: double-buffered in+out footprint plus headroom,
    # capped well under physical VMEM. Avoids v5e's 16 MiB scoped default
    # forcing smaller blocks, and never over-commits v7x's 64 MiB.
    footprint = bm * HW * (2 * in_isize + 6 * out_isize)
    vmem_limit = int(min(int(0.8 * vmem_bytes),
                         max(32 << 20, footprint + (8 << 20))))

    kernel = _make_input_kernel(conf, HW)

    out_flat = pl.pallas_call(
        kernel,
        out_shape=jax.ShapeDtypeStruct((M, 3 * HW), out_dtype),
        grid_spec=pl.GridSpec(
            grid=grid,
            in_specs=[pl.BlockSpec((bm, HW), lambda i: (i, 0))],
            out_specs=pl.BlockSpec((bm, 3 * HW), lambda i: (i, 0)),
        ),
        compiler_params=pltpu.CompilerParams(
            dimension_semantics=("parallel",),
            vmem_limit_bytes=vmem_limit,
        ),
    )(x2)

    # Layout-preserving reshape back to the module's output shape.
    return out_flat.reshape(M, 3, H, W)


def _reference(x, conf):
    """Pure-JAX reference matching the PyTorch semantics."""
    B, N, _, H, W = x.shape
    if conf == "repeat":
        xc = jnp.concatenate([x, x, x], axis=2)
    elif conf == "single":
        z = jnp.zeros_like(x)
        xc = jnp.concatenate([x, z, z], axis=2)
    else:
        raise Exception("Invalid input type")
    mean = jnp.asarray(_MEAN, dtype=jnp.float32).reshape(1, 1, 3, 1, 1)
    std = jnp.asarray(_STD, dtype=jnp.float32).reshape(1, 1, 3, 1, 1)
    xc = (xc - mean) / std
    return xc.reshape(-1, 3, H, W)


if __name__ == "__main__":
    key = jax.random.PRNGKey(0)
    B, N, H, W = 2, 2, S_RESNET_SHAPE[0], S_RESNET_SHAPE[1]
    x = jax.random.uniform(key, (B, N, 1, H, W), dtype=jnp.float32)

    ok = True
    for conf in ("repeat", "single"):
        out = input_forward(x, cnn_type="resnet", conf=conf)
        out = jax.block_until_ready(out)
        ref = _reference(x, conf)
        if out.shape != (B * N, 3, H, W):
            ok = False
        if not jnp.allclose(out, ref, rtol=1e-5, atol=1e-5):
            ok = False

    # Larger M exercises the multi-step grid / block-size selection path.
    B2, N2 = 4, 8
    x_big = jax.random.uniform(key, (B2, N2, 1, H, W), dtype=jnp.float32)
    out_big = jax.block_until_ready(
        input_forward(x_big, cnn_type="resnet", conf="repeat"))
    ref_big = _reference(x_big, "repeat")
    if out_big.shape != (B2 * N2, 3, H, W):
        ok = False
    if not jnp.allclose(out_big, ref_big, rtol=1e-5, atol=1e-5):
        ok = False

    # vggish path (reshape only)
    xv = jax.random.uniform(key, (B, N, 1, S_VGGISH_SHAPE[0], S_VGGISH_SHAPE[1]),
                            dtype=jnp.float32)
    outv = jax.block_until_ready(input_forward(xv, cnn_type="vggish"))
    if outv.shape != (B * N, 1, S_VGGISH_SHAPE[0], S_VGGISH_SHAPE[1]):
        ok = False

    if ok:
        print("KERNEL_OK")
</pallas_src>

<mosaic_0001>
module attributes {stable_mosaic.version = 11 : i64} {
  func.func @kernel(%arg0: i32, %arg1: memref<4x256xf32, #tpu.memory_space<vmem>>, %arg2: memref<4x768xf32, #tpu.memory_space<vmem>>) attributes {dimension_semantics = [#tpu.dimension_semantics<parallel>], iteration_bounds = array<i64: 1>, scalar_prefetch = 0 : i64, scratch_operands = 0 : i64, tpu.core_type = #tpu.core_type<tc>, window_params = [{transform_indices = @transform_0, window_bounds = array<i64: 4, 256>}, {transform_indices = @transform_1, window_bounds = array<i64: 4, 768>}]} {
    %c0 = arith.constant 0 : index
    %c0_0 = arith.constant 0 : index
    %0 = vector.load %arg1[%c0, %c0_0] : memref<4x256xf32, #tpu.memory_space<vmem>>, vector<4x256xf32>
    %cst = arith.constant 4.850000e-01 : f32
    %1 = vector.broadcast %cst : f32 to vector<4x256xf32>
    %2 = arith.subf %0, %1 : vector<4x256xf32>
    %cst_1 = arith.constant 4.36681223 : f32
    %3 = vector.broadcast %cst_1 : f32 to vector<4x256xf32>
    %4 = arith.mulf %2, %3 : vector<4x256xf32>
    %c0_2 = arith.constant 0 : index
    %c0_3 = arith.constant 0 : index
    %5 = vector.load %arg2[%c0_2, %c0_3] : memref<4x768xf32, #tpu.memory_space<vmem>>, vector<4x256xf32>
    tpu.vector_store %arg2[%c0_2, %c0_3], %4 {strides = array<i32>} : memref<4x768xf32, #tpu.memory_space<vmem>>, vector<4x256xf32>,
    %cst_4 = arith.constant 4.560000e-01 : f32
    %6 = vector.broadcast %cst_4 : f32 to vector<4x256xf32>
    %7 = arith.subf %0, %6 : vector<4x256xf32>
    %cst_5 = arith.constant 4.46428585 : f32
    %8 = vector.broadcast %cst_5 : f32 to vector<4x256xf32>
    %9 = arith.mulf %7, %8 : vector<4x256xf32>
    %c0_6 = arith.constant 0 : index
    %c256 = arith.constant 256 : index
    %10 = vector.load %arg2[%c0_6, %c256] : memref<4x768xf32, #tpu.memory_space<vmem>>, vector<4x256xf32>
    tpu.vector_store %arg2[%c0_6, %c256], %9 {strides = array<i32>} : memref<4x768xf32, #tpu.memory_space<vmem>>, vector<4x256xf32>,
    %cst_7 = arith.constant 4.060000e-01 : f32
    %11 = vector.broadcast %cst_7 : f32 to vector<4x256xf32>
    %12 = arith.subf %0, %11 : vector<4x256xf32>
    %cst_8 = arith.constant 4.44444466 : f32
    %13 = vector.broadcast %cst_8 : f32 to vector<4x256xf32>
    %14 = arith.mulf %12, %13 : vector<4x256xf32>
    %c0_9 = arith.constant 0 : index
    %c512 = arith.constant 512 : index
    %15 = vector.load %arg2[%c0_9, %c512] : memref<4x768xf32, #tpu.memory_space<vmem>>, vector<4x256xf32>
    tpu.vector_store %arg2[%c0_9, %c512], %14 {strides = array<i32>} : memref<4x768xf32, #tpu.memory_space<vmem>>, vector<4x256xf32>,
    return
  }
  func.func @transform_0(%arg0: i32) -> (i32, i32) {
    %c0_i32 = arith.constant 0 : i32
    %c0_i32_0 = arith.constant 0 : i32
    return %arg0, %c0_i32 : i32, i32
  }
  func.func @transform_1(%arg0: i32) -> (i32, i32) {
    %c0_i32 = arith.constant 0 : i32
    %c0_i32_0 = arith.constant 0 : i32
    return %arg0, %c0_i32 : i32, i32
  }
}

</mosaic_0001>

<bundles_post_ra>
// kernel: tpu_custom_call.1
= control target key start
LH: loop header
LB: loop body
LE: loop exit
PB: predicated region body
PF: predicated region fallthrough
CT: control target
= control target key end

     0   :  { %6 = vsyncpa [#allocation3], 0  ;;  %s135_s0 = inlined_call_operand.hbm [shape: f32[4,256], index: 0, kind: input, shape index: {}]   ;;  %s136_s1 = inlined_call_operand.hbm [shape: f32[4,768], index: 1, kind: output, shape index: {}]  }
   0x1   :  { %7 = vsyncpa [#allocation4], 0  ;;  %s99_s6 = smov [#allocation2]   ;;  %s51_s10 = scalar_lea.hbm %s135_s0, 128 }
   0x2   :  { %s14_s7 = sshll.u32 %s99_s6, 4  ;;  %p52_p0 = scmp.ne.s32.totalorder %s135_s0, %s51_s10  ;;  %s15_s7 = int_to_ptr.vmem [resolvable:$true] %s14_s7 }
   0x3   :  { %p55_p1 = scmp.lt.u32.totalorder %s51_s10, %s135_s0 }
   0x5   :  { %p57_p2 = pnand %p55_p1, %p52_p0 }
   0x7   :  { %60 = shalt.err (!%p57_p2)
}
   0x8   :  { %s61_s15 = scalar_lea.vmem %s15_s7, 128  ;;  %p66_p4 = scmp.lt.s32.totalorder %s15_s7, %s15_s7 }
   0x9   :  { %p62_p3 = scmp.ne.s32.totalorder %s15_s7, %s61_s15  ;;  %p67_p5 = scmp.lt.s32.totalorder %s61_s15, %s61_s15 }
   0xb   :  { %p68_p6 = por %p67_p5, %p66_p4 }
   0xd   :  { %p69_p7 = pnand %p68_p6, %p62_p3 }
   0xf   :  { %72 = shalt.err (!%p69_p7)
}
  0x10   :  { %17 = dma.hbm_to_vmem [thread:$0]  %s135_s0, 128, %s15_s7, [#allocation3]  }
  0x11   :  { %95 = dma.done.wait [#allocation3], 128  }
  0x12   :  { %96 = vsyncadd [#allocation3], 4294967168  ;;  %v21_v0 = vld [vmem:[#allocation2] sm:$0xff]  ;;  %s100_s18 = smov [#allocation5]  }
  0x13   :  { %s37_s19 = sshll.u32 %s100_s18, 4  ;;  %v46_v1 = vadd.f32 -0.485, %v21_v0  ;;  %v47_v2 = vadd.f32 -0.456, %v21_v0  ;;  %s38_s19 = int_to_ptr.vmem [resolvable:$true] %s37_s19 }
  0x14   :  { %v48_v3 = vadd.f32 -0.406, %v21_v0  ;;  %s73_s20 = scalar_lea.vmem %s38_s19, 384  ;;  %p78_p9 = scmp.lt.s32.totalorder %s38_s19, %s38_s19 }
  0x15   :  { %v23_v4 = vmul.f32 4.366812, %v46_v1  ;;  %v26_v5 = vmul.f32 4.464286, %v47_v2  ;;  %p74_p8 = scmp.ne.s32.totalorder %s38_s19, %s73_s20  ;;  %p79_p10 = scmp.lt.s32.totalorder %s73_s20, %s73_s20 }
  0x16   :  { %v29_v6 = vmul.f32 4.4444447, %v48_v3 }
  0x17   :  { %24 = vst [vmem:[#allocation5] sm:$0xff] %v23_v4  ;;  %27 = vst [vmem:[#allocation5 + $0x8] sm:$0xff] %v26_v5  ;;  %p80_p11 = por %p79_p10, %p78_p9 }
  0x18   :  { %30 = vst [vmem:[#allocation5 + $0x10] sm:$0xff] %v29_v6 }
  0x19   :  { %p81_p12 = pnand %p80_p11, %p74_p8 }
  0x1b   :  { %84 = shalt.err (!%p81_p12)
}
  0x1c   :  { %s85_s22 = scalar_lea.hbm %s136_s1, 384 }
  0x1d   :  { %p86_p13 = scmp.ne.s32.totalorder %s136_s1, %s85_s22  ;;  %p89_p0 = scmp.lt.u32.totalorder %s85_s22, %s136_s1 }
  0x1f   :  { %p91_p1 = pnand %p89_p0, %p86_p13 }
  0x21   :  { %94 = shalt.err (!%p91_p1)
}
  0x22   :  { %40 = dma.vmem_to_hbm [thread:$0]  %s38_s19, 384, %s136_s1, [#allocation4]  }
  0x23   :  { %97 = dma.done.wait [#allocation4], 384  }
  0x24   :  { %98 = vsyncadd [#allocation4], 4294966912 }
  0x25   :  { %44 = vsyncpa [#allocation3], 1 }
  0x26   :  { %45 = vsyncpa [#allocation4], 1 }

</bundles_post_ra>
